<compile_context>
chip_gen: v6e
topology: v6e:2x2x1
jax: 0.10.0
libtpu: 0.0.40
codegen_flags: <defaults>
</compile_context>

<pallas_src>
import numpy as np
import jax
import jax.numpy as jnp
from jax import lax
from jax.experimental import pallas as pl
from jax.experimental.pallas import tpu as pltpu

LANE = 128       # TPU lane width
SUB = 8          # sublane count
MAX_TILE_B = 512 # batch rows per grid step (mem-bound sweet spot per roofline)


def _round_up(n, m):
    return ((n + m - 1) // m) * m


def build_prnn(NET, B, I, key):
    """Deterministic parameter + hidden-state init for the graph."""
    n_nodes = len(NET)
    keys = jax.random.split(key, 2 * n_nodes + 3)
    params = {}
    # Layers[-1] = Conv1d(I, I, 1, groups=I, bias=True): per-channel affine.
    params["conv_w"] = jax.random.normal(keys[0], (1, I), jnp.float32) * 0.5
    params["conv_b"] = jax.random.normal(keys[1], (1, I), jnp.float32) * 0.5
    for i in range(n_nodes):
        out_d, in_d = int(NET[i][1]), int(NET[i][2])
        W = jax.random.normal(keys[2 + 2 * i], (out_d, in_d), jnp.float32) / np.sqrt(in_d)
        # Quantize linear weights to bf16 (the MXU operand dtype); the numpy
        # reference uses the exact same values, so only the activation cast
        # inside the kernel introduces (tiny) extra rounding.
        params[f"W{i}"] = W.astype(jnp.bfloat16).astype(jnp.float32)
        params[f"b{i}"] = jax.random.normal(keys[3 + 2 * i], (1, out_d), jnp.float32) * 0.1
    # Hidden state (zeros in the torch __init__; random here so the recurrent
    # edges of the graph are actually exercised).
    hstate = {}
    hk = jax.random.split(keys[-1], n_nodes)
    for i in range(n_nodes):
        hstate[i] = jax.random.normal(hk[i], (B, int(NET[i][1])), jnp.float32)
    return params, hstate


def make_prnn_forward(NET, B, I, params):
    """Builds the Pallas forward function for the STACK=False path."""
    n_nodes = len(NET)
    times = np.array([float(NET[i][3]) for i in range(n_nodes)])
    order = [int(i) for i in np.argsort(times, kind="stable")]   # pinned tie-break
    idx_end = order[-1]
    out_dims = [int(NET[i][1]) for i in range(n_nodes)]
    assert I <= LANE and all(d <= LANE for d in out_dims)

    # ---------------- lane layout of the single 128-wide state slab ----------
    rec_used = set()
    for i in range(n_nodes):
        for (j, _k) in NET[i][-1]:
            j = int(j)
            if j != 0 and times[j] >= times[i]:
                rec_used.add(j)
    x_off, nxt = 0, I
    h_off = {}
    for j in sorted(rec_used):          # old hidden h_j (recurrent sources only)
        h_off[j] = nxt
        nxt += out_dims[j]
    t_off = {}
    for j in range(n_nodes):            # trace_j (new value) for every node
        t_off[j] = nxt
        nxt += out_dims[j]
    assert nxt <= LANE, "feature width exceeds 128 lanes (needs multi-slab layout)"

    # ---------------- waves: fuse nodes with no intra-wave trace deps --------
    waves, cur, cur_set = [], [], set()
    for i in order:
        needs_cur_trace = any(
            int(j) != 0 and times[int(j)] < times[i] and int(j) in cur_set
            for (j, _k) in NET[i][-1])
        if needs_cur_trace and cur:
            waves.append(cur)
            cur, cur_set = [], set()
        cur.append(i)
        cur_set.add(i)
    if cur:
        waves.append(cur)
    n_waves = len(waves)

    # ---------------- resident parameter slabs --------------------------------
    # f32 aux slab: row0 conv_w, row1 conv_b, row 2+w = bias row of wave w.
    F_ROWS = _round_up(2 + n_waves, SUB)
    aux = np.zeros((F_ROWS, LANE), np.float32)
    aux[0, :I] = np.asarray(params["conv_w"], np.float32).reshape(-1)
    aux[1, :I] = np.asarray(params["conv_b"], np.float32).reshape(-1)
    # bf16 weight slab: one (128,128) block per wave; rows = source lanes of the
    # state slab, columns = the wave's nodes' output lanes (their t_off ranges).
    wblk = np.zeros((n_waves * LANE, LANE), np.float32)
    wave_meta = []
    for w, nodes in enumerate(waves):
        relu_ranges, relu_flags = [], []
        for i in nodes:
            W = np.asarray(params[f"W{i}"], np.float32)        # (out_d, n_edges)
            d = out_dims[i]
            aux[2 + w, t_off[i]:t_off[i] + d] = np.asarray(
                params[f"b{i}"], np.float32).reshape(-1)
            for p, (j, k) in enumerate(NET[i][-1]):
                j, k = int(j), int(k)
                if j == 0:
                    row = x_off + k                 # external input (post-conv)
                elif times[j] >= times[i]:
                    row = h_off[j] + k              # recurrent edge -> old h[j]
                else:
                    row = t_off[j] + k              # feed-forward edge -> trace[j]
                wblk[w * LANE + row, t_off[i]:t_off[i] + d] += W[:, p]
            if i != 0:
                relu_ranges.append((t_off[i], d))
            relu_flags.append(i != 0)
        wave_meta.append(dict(all_relu=all(relu_flags),
                              none_relu=not any(relu_flags),
                              relu_ranges=tuple(relu_ranges)))
    aux_slab = jnp.asarray(aux)                       # (F_ROWS,128) f32, resident
    w_slab = jnp.asarray(wblk).astype(jnp.bfloat16)   # (n_waves*128,128) bf16

    # ---------------- batch tiling --------------------------------------------
    n_tiles = max(1, -(-B // MAX_TILE_B))
    TILE_B = _round_up(-(-B // n_tiles), SUB)         # minimise last-tile padding
    B_pad = n_tiles * TILE_B
    grid = (B_pad // TILE_B,)

    # ---------------- kernel ---------------------------------------------------
    def kernel(s_ref, a_ref, w_ref, o_ref):
        lane = lax.broadcasted_iota(jnp.int32, (TILE_B, LANE), 1)
        s = s_ref[...]
        # Layers[-1]: depthwise 1x1 Conv1d + ReLU == per-channel affine + ReLU,
        # applied to the x lanes only; h / trace lanes pass through untouched.
        conv = jnp.maximum(s * a_ref[0:1, :] + a_ref[1:2, :], 0.0)
        feat = jnp.where(lane < I, conv, s)
        for w, meta in enumerate(wave_meta):
            raw = jnp.dot(feat.astype(jnp.bfloat16),
                          w_ref[w * LANE:(w + 1) * LANE, :],
                          preferred_element_type=jnp.float32)
            raw = raw + a_ref[2 + w:3 + w, :]
            if meta["all_relu"]:
                act = jnp.maximum(raw, 0.0)
            elif meta["none_relu"]:
                act = raw
            else:
                m = None
                for (off, d) in meta["relu_ranges"]:
                    r = (lane >= off) & (lane < off + d)
                    m = r if m is None else (m | r)
                act = jnp.where(m, jnp.maximum(raw, 0.0), raw)
            # `act` is exactly zero outside this wave's output lanes (zero
            # weight columns + zero bias), so accumulating keeps x / old h
            # intact and deposits each node's trace at its t_off lane range.
            feat = feat + act
        o_ref[...] = feat

    pallas_fn = pl.pallas_call(
        kernel,
        out_shape=jax.ShapeDtypeStruct((B_pad, LANE), jnp.float32),
        grid=grid,
        in_specs=[
            pl.BlockSpec((TILE_B, LANE), lambda b: (b, 0)),           # state slab
            pl.BlockSpec((F_ROWS, LANE), lambda b: (0, 0)),           # f32 aux (resident)
            pl.BlockSpec((n_waves * LANE, LANE), lambda b: (0, 0)),   # bf16 weights (resident)
        ],
        out_specs=pl.BlockSpec((TILE_B, LANE), lambda b: (b, 0)),
        input_output_aliases={0: 0},   # updated state slab overwrites the input
        compiler_params=pltpu.CompilerParams(
            dimension_semantics=("parallel",),
            vmem_limit_bytes=32 * 1024 * 1024),
    )

    def pack_state(x_np, h_np):
        """One-time packing of x + hidden state into the padded lane-dense slab."""
        s = np.zeros((B_pad, LANE), np.float32)
        s[:B, :I] = np.asarray(x_np, np.float32)
        for j, off in h_off.items():
            s[:B, off:off + out_dims[j]] = np.asarray(h_np[j], np.float32)
        return jnp.asarray(s)

    def _forward(state):
        # No per-call padding/repacking: `state` is already in the padded
        # lane-dense layout.  Padded rows [B, B_pad) carry harmless values and
        # every consumer slices [:B].
        full = pallas_fn(state, aux_slab, w_slab)
        out = full[:B, t_off[idx_end]:t_off[idx_end] + out_dims[idx_end]]
        return out, full

    # The state buffer is donated: it is consumed and handed back (updated) as
    # `full`, so the recurrent h write-back needs no extra HBM round trip.
    # NOTE: parameters are closed over (w_slab/aux_slab); updating them
    # requires rebuilding this forward.
    forward = jax.jit(_forward, donate_argnums=(0,))

    info = dict(idx_end=idx_end, out_dims=out_dims, x_off=x_off,
                h_off=h_off, t_off=t_off, B_pad=B_pad,
                TILE_B=TILE_B, n_waves=n_waves)
    return forward, pack_state, info


def prnn_reference(NET, params, hstate, x):
    """Pure numpy reference mirroring pRNN.forward (STACK=False) exactly."""
    n_nodes = len(NET)
    times = np.array([float(NET[i][3]) for i in range(n_nodes)])
    order = np.argsort(times, kind="stable")
    xin = np.maximum(
        np.asarray(x) * np.asarray(params["conv_w"]) + np.asarray(params["conv_b"]), 0.0)
    trace = [None] * n_nodes
    for i in order:
        i = int(i)
        cols = []
        for (j, k) in NET[i][-1]:
            j, k = int(j), int(k)
            if j == 0:
                cols.append(xin[:, k:k + 1])
            elif times[j] >= times[i]:
                cols.append(np.asarray(hstate[j])[:, k:k + 1])
            else:
                cols.append(trace[j][:, k:k + 1])
        tin = np.concatenate(cols, axis=1)
        W = np.asarray(params[f"W{i}"]); b = np.asarray(params[f"b{i}"])
        y = tin @ W.T + b
        if i != 0:
            y = np.maximum(y, 0.0)
        trace[i] = y
    return int(order[-1]), trace, xin


if __name__ == "__main__":
    # NET rows: [id, out_dim, in_dim, order_time, edge_list of (src_node, col)]
    # src_node 0 == the external input (through the depthwise conv), matching
    # the `if j == 0` branch in graph2net.
    rows = [
        [0, 8, 4, 1.0, ((0, 0), (0, 1), (0, 2), (0, 3))],
        [1, 8, 6, 2.0, ((0, 0), (0, 2), (1, 0), (1, 3), (2, 1), (2, 4))],
        [2, 6, 5, 3.0, ((1, 0), (1, 5), (0, 1), (2, 0), (2, 2))],
    ]
    NET = np.empty((len(rows), 5), dtype=object)
    for r, row in enumerate(rows):
        for c, v in enumerate(row):
            NET[r, c] = v

    B, I = 4, 4
    key = jax.random.PRNGKey(0)
    kp, kx = jax.random.split(key)
    params, hstate = build_prnn(NET, B, I, kp)
    x = jax.random.normal(kx, (B, I), jnp.float32)

    forward, pack_state, info = make_prnn_forward(NET, B, I, params)
    state0 = pack_state(np.asarray(x), {j: np.asarray(v) for j, v in hstate.items()})
    out, full = forward(state0)           # state0 is donated / consumed
    out = jax.block_until_ready(out)
    full_np = np.asarray(full)

    ref_end, trace_ref, xin_ref = prnn_reference(NET, params, hstate, x)
    assert int(info["idx_end"]) == ref_end
    # bf16 MXU operands (weights exactly representable, activations rounded to
    # bf16 at the dot) -> loosened tolerance vs the pure-f32 reference.
    RTOL = ATOL = 3e-2
    np.testing.assert_allclose(np.asarray(out), trace_ref[ref_end], rtol=RTOL, atol=ATOL)
    # The returned slab also carries the full hidden-state write-back
    # (self.h[t] <- trace[t], self.h[-1] <- conv(x)); verify those lanes too.
    np.testing.assert_allclose(full_np[:B, :I], xin_ref, rtol=1e-5, atol=1e-5)
    for j in range(len(rows)):
        off, d = info["t_off"][j], info["out_dims"][j]
        np.testing.assert_allclose(full_np[:B, off:off + d], trace_ref[j],
                                   rtol=RTOL, atol=ATOL)
    print("KERNEL_OK")
</pallas_src>

<mosaic_0001>
module attributes {stable_mosaic.version = 11 : i64} {
  func.func @kernel(%arg0: i32, %arg1: memref<8x128xf32, #tpu.memory_space<vmem>>, %arg2: memref<8x128xf32, #tpu.memory_space<vmem>>, %arg3: memref<256x128xbf16, #tpu.memory_space<vmem>>, %arg4: memref<8x128xf32, #tpu.memory_space<vmem>>) attributes {dimension_semantics = [#tpu.dimension_semantics<parallel>], iteration_bounds = array<i64: 1>, scalar_prefetch = 0 : i64, scratch_operands = 0 : i64, tpu.core_type = #tpu.core_type<tc>, window_params = [{transform_indices = @transform_0, window_bounds = array<i64: 8, 128>}, {pipeline_mode = #tpu.pipeline_mode<synchronous>, transform_indices = @transform_1, window_bounds = array<i64: 8, 128>}, {pipeline_mode = #tpu.pipeline_mode<synchronous>, transform_indices = @transform_2, window_bounds = array<i64: 256, 128>}, {transform_indices = @transform_3, window_bounds = array<i64: 8, 128>}]} {
    %0 = tpu.iota {dimensions = array<i32: 1>} : vector<8x128xi32>
    %c0 = arith.constant 0 : index
    %c0_0 = arith.constant 0 : index
    %1 = vector.load %arg1[%c0, %c0_0] : memref<8x128xf32, #tpu.memory_space<vmem>>, vector<8x128xf32>
    %c0_1 = arith.constant 0 : index
    %c0_2 = arith.constant 0 : index
    %2 = vector.load %arg2[%c0_1, %c0_2] : memref<8x128xf32, #tpu.memory_space<vmem>>, vector<1x128xf32>
    %3 = vector.broadcast %2 : vector<1x128xf32> to vector<8x128xf32>
    %4 = arith.mulf %1, %3 : vector<8x128xf32>
    %c1 = arith.constant 1 : index
    %c0_3 = arith.constant 0 : index
    %5 = vector.load %arg2[%c1, %c0_3] : memref<8x128xf32, #tpu.memory_space<vmem>>, vector<1x128xf32>
    %6 = vector.broadcast %5 : vector<1x128xf32> to vector<8x128xf32>
    %7 = arith.addf %4, %6 : vector<8x128xf32>
    %cst = arith.constant 0.000000e+00 : f32
    %8 = vector.broadcast %cst : f32 to vector<8x128xf32>
    %9 = arith.maximumf %7, %8 : vector<8x128xf32>
    %c4_i32 = arith.constant 4 : i32
    %10 = vector.broadcast %c4_i32 : i32 to vector<8x128xi32>
    %11 = arith.cmpi slt, %0, %10 : vector<8x128xi32>
    %12 = arith.select %11, %9, %1 : vector<8x128xi1>, vector<8x128xf32>
    %13 = arith.truncf %12 : vector<8x128xf32> to vector<8x128xbf16>
    %c0_4 = arith.constant 0 : index
    %c0_5 = arith.constant 0 : index
    %14 = vector.load %arg3[%c0_4, %c0_5] : memref<256x128xbf16, #tpu.memory_space<vmem>>, vector<128x128xbf16>
    %cst_6 = arith.constant dense<0.000000e+00> : vector<8x128xf32>
    %15 = tpu.matmul %13, %14, %cst_6 {dimension_numbers = #tpu.dot_dimension_numbers<[1], [0], [0], [1], [0, 0, 1, 1], [], []>} : vector<8x128xbf16>, vector<128x128xbf16>, vector<8x128xf32> -> vector<8x128xf32>
    %c2 = arith.constant 2 : index
    %c0_7 = arith.constant 0 : index
    %16 = vector.load %arg2[%c2, %c0_7] : memref<8x128xf32, #tpu.memory_space<vmem>>, vector<1x128xf32>
    %17 = vector.broadcast %16 : vector<1x128xf32> to vector<8x128xf32>
    %18 = arith.addf %15, %17 : vector<8x128xf32>
    %c26_i32 = arith.constant 26 : i32
    %19 = vector.broadcast %c26_i32 : i32 to vector<8x128xi32>
    %20 = arith.cmpi sge, %0, %19 : vector<8x128xi32>
    %c34_i32 = arith.constant 34 : i32
    %21 = vector.broadcast %c34_i32 : i32 to vector<8x128xi32>
    %22 = arith.cmpi slt, %0, %21 : vector<8x128xi32>
    %23 = arith.andi %20, %22 : vector<8x128xi1>
    %cst_8 = arith.constant 0.000000e+00 : f32
    %24 = vector.broadcast %cst_8 : f32 to vector<8x128xf32>
    %25 = arith.maximumf %18, %24 : vector<8x128xf32>
    %26 = arith.select %23, %25, %18 : vector<8x128xi1>, vector<8x128xf32>
    %27 = arith.addf %12, %26 : vector<8x128xf32>
    %28 = arith.truncf %27 : vector<8x128xf32> to vector<8x128xbf16>
    %c128 = arith.constant 128 : index
    %c0_9 = arith.constant 0 : index
    %29 = vector.load %arg3[%c128, %c0_9] : memref<256x128xbf16, #tpu.memory_space<vmem>>, vector<128x128xbf16>
    %cst_10 = arith.constant dense<0.000000e+00> : vector<8x128xf32>
    %30 = tpu.matmul %28, %29, %cst_10 {dimension_numbers = #tpu.dot_dimension_numbers<[1], [0], [0], [1], [0, 0, 1, 1], [], []>} : vector<8x128xbf16>, vector<128x128xbf16>, vector<8x128xf32> -> vector<8x128xf32>
    %c3 = arith.constant 3 : index
    %c0_11 = arith.constant 0 : index
    %31 = vector.load %arg2[%c3, %c0_11] : memref<8x128xf32, #tpu.memory_space<vmem>>, vector<1x128xf32>
    %32 = vector.broadcast %31 : vector<1x128xf32> to vector<8x128xf32>
    %33 = arith.addf %30, %32 : vector<8x128xf32>
    %cst_12 = arith.constant 0.000000e+00 : f32
    %34 = vector.broadcast %cst_12 : f32 to vector<8x128xf32>
    %35 = arith.maximumf %33, %34 : vector<8x128xf32>
    %36 = arith.addf %27, %35 : vector<8x128xf32>
    %c0_13 = arith.constant 0 : index
    %c0_14 = arith.constant 0 : index
    %37 = vector.load %arg4[%c0_13, %c0_14] : memref<8x128xf32, #tpu.memory_space<vmem>>, vector<8x128xf32>
    tpu.vector_store %arg4[%c0_13, %c0_14], %36 {strides = array<i32>} : memref<8x128xf32, #tpu.memory_space<vmem>>, vector<8x128xf32>,
    return
  }
  func.func @transform_0(%arg0: i32) -> (i32, i32) {
    %c0_i32 = arith.constant 0 : i32
    %c0_i32_0 = arith.constant 0 : i32
    return %arg0, %c0_i32 : i32, i32
  }
  func.func @transform_1(%arg0: i32) -> (i32, i32) {
    %c0_i32 = arith.constant 0 : i32
    %c0_i32_0 = arith.constant 0 : i32
    %c0_i32_1 = arith.constant 0 : i32
    return %c0_i32, %c0_i32_0 : i32, i32
  }
  func.func @transform_2(%arg0: i32) -> (i32, i32) {
    %c0_i32 = arith.constant 0 : i32
    %c0_i32_0 = arith.constant 0 : i32
    %c0_i32_1 = arith.constant 0 : i32
    return %c0_i32, %c0_i32_0 : i32, i32
  }
  func.func @transform_3(%arg0: i32) -> (i32, i32) {
    %c0_i32 = arith.constant 0 : i32
    %c0_i32_0 = arith.constant 0 : i32
    return %arg0, %c0_i32 : i32, i32
  }
}

</mosaic_0001>

<bundles_post_ra>
// kernel: _forward.1
= control target key start
LH: loop header
LB: loop body
LE: loop exit
PB: predicated region body
PF: predicated region fallthrough
CT: control target
= control target key end

     0   :  { %8 = vsyncpa [#allocation3], 0  ;;  %s544_s0 = inlined_call_operand.hbm [shape: f32[8,128], index: 0, kind: input, shape index: {}, may-alias: {0,3}]   ;;  %s545_s1 = inlined_call_operand.hbm [shape: f32[8,128], index: 1, kind: input, shape index: {}]   ;;  %s546_s2 = inlined_call_operand.hbm [shape: bf16[256,128], index: 2, kind: input, shape index: {}]   ;;  %s547_s3 = inlined_call_operand.hbm [shape: f32[8,128], index: 3, kind: output, shape index: {}, may-alias: {0,3}]  }
   0x1   :  { %9 = vsyncpa [#allocation6], 0 }
   0x2   :  { %10 = vsyncpa [#allocation4], 0  ;;  %s504_s12 = smov [#allocation5]   ;;  %s505_s14 = smov [#allocation2]  }
   0x3   :  { %s27_s13 = sshll.u32 %s504_s12, 4  ;;  %s17_s15 = sshll.u32 %s505_s14, 4  ;;  %s28_s13 = int_to_ptr.vmem [resolvable:$true] %s27_s13  ;;  %s18_s15 = int_to_ptr.vmem [resolvable:$true] %s17_s15 }
   0x4   :  { %s426_s16 = scalar_lea.vmem %s28_s13, 128  ;;  %p431_p1 = scmp.lt.s32.totalorder %s28_s13, %s28_s13 }
   0x5   :  { %p427_p0 = scmp.ne.s32.totalorder %s28_s13, %s426_s16  ;;  %p432_p2 = scmp.lt.s32.totalorder %s426_s16, %s426_s16 }
   0x7   :  { %p433_p3 = por %p432_p2, %p431_p1 }
   0x9   :  { %p434_p4 = pnand %p433_p3, %p427_p0 }
   0xb   :  { %437 = shalt.err (!%p434_p4)
}
   0xc   :  { %30 = dma.hbm_to_vmem [thread:$0]  %s545_s1, 128, %s28_s13, [#allocation6]  }
   0xd   :  { %s446_s19 = scalar_lea.vmem %s18_s15, 128  ;;  %p451_p6 = scmp.lt.s32.totalorder %s18_s15, %s18_s15 }
   0xe   :  { %p447_p5 = scmp.ne.s32.totalorder %s18_s15, %s446_s19  ;;  %p452_p7 = scmp.lt.s32.totalorder %s446_s19, %s446_s19 }
  0x10   :  { %p453_p8 = por %p452_p7, %p451_p6 }
  0x12   :  { %p454_p9 = pnand %p453_p8, %p447_p5 }
  0x14   :  { %457 = shalt.err (!%p454_p9)
}
  0x15   :  { %20 = dma.hbm_to_vmem [thread:$0]  %s544_s0, 128, %s18_s15, [#allocation3]  }
  0x16   :  { %s506_s22 = smov [#allocation7]  }
  0x17   :  { %s36_s23 = sshll.u32 %s506_s22, 4  ;;  %s37_s23 = int_to_ptr.vmem [resolvable:$true] %s36_s23 }
  0x18   :  { %s466_s24 = scalar_lea.vmem %s37_s23, 2048  ;;  %p471_p11 = scmp.lt.s32.totalorder %s37_s23, %s37_s23 }
  0x19   :  { %p467_p10 = scmp.ne.s32.totalorder %s37_s23, %s466_s24  ;;  %p472_p12 = scmp.lt.s32.totalorder %s466_s24, %s466_s24 }
  0x1b   :  { %p473_p13 = por %p472_p12, %p471_p11 }
  0x1d   :  { %p474_p0 = pnand %p473_p13, %p467_p10 }
  0x1f   :  { %477 = shalt.err (!%p474_p0)
}
  0x20   :  { %s507_s1 = smov 64   ;;  %s508_s25 = smov 4  }
  0x21   :  { %42 = dma.hbm_to_vmem [thread:$0]  %s546_s2, 2048, %s37_s23, [#allocation6], %s507_s1, %s507_s1, %s508_s25  }
  0x22   :  { %498 = dma.done.wait [#allocation3], 128  }
  0x23   :  { %499 = vsyncadd [#allocation3], 4294967168 }
  0x24   :  { %500 = dma.done.wait [#allocation6], 2176  }
  0x25   :  { %501 = vsyncadd [#allocation6], 4294965120  ;;  %v509_v0 = vmov 0.0   ;;  %vm510_vm0 = vmmov 0   ;;  %v402_v1 = vld [vmem:[#allocation7 + $0x38] sm:$0xff]   ;;  %v403_v2 = vld [vmem:[#allocation7 + $0x30] sm:$0xff]   ;;  %v53_v12 = vlaneseq }
  0x26   :  { %354 = vmatprep.subr.bf16.mxu0 %v509_v0  ;;  %370 = vmatprep.mubr.msk.bf16.mxu0 %vm510_vm0, %v509_v0  ;;  %v404_v3 = vld [vmem:[#allocation7 + $0x28] sm:$0xff]   ;;  %v405_v4 = vld [vmem:[#allocation7 + $0x20] sm:$0xff]   ;;  %v55_v5 = vld [vmem:[#allocation2] sm:$0xff]  ;;  %s511_s0 = smov [#allocation8]  }
  0x27   :  { %374 = vmatprep.subr.bf16.mxu1 %v509_v0  ;;  %390 = vmatprep.mubr.msk.bf16.mxu1 %vm510_vm0, %v509_v0  ;;  %v410_v6 = vld [vmem:[#allocation7 + $0x78] sm:$0xff]   ;;  %v411_v8 = vld [vmem:[#allocation7 + $0x70] sm:$0xff]   ;;  %v412_v13 = vld [vmem:[#allocation7 + $0x68] sm:$0xff]   ;;  %v54_v16 = vand.u32 127, %v53_v12  ;;  %s306_s2 = sshll.u32 %s511_s0, 4  ;;  %s307_s2 = int_to_ptr.vmem [resolvable:$true] %s306_s2 }
  0x28   :  { %355 = vmatpush3.bf16.msra.mxu0 %v402_v1  ;;  %v316_v7 = vld [vmem:[#allocation5] ss:$0 sm:$0xff]  ;;  %375 = vmatpush3.bf16.msra.mxu1 %v410_v6  ;;  %v317_v11 = vld [vmem:[#allocation5 + $0x1] ss:$0 sm:$0xff]  ;;  %v407_v14 = vld [vmem:[#allocation7 + $0x10] sm:$0xff]   ;;  %s478_s28 = scalar_lea.vmem %s307_s2, 128  ;;  %p483_p2 = scmp.lt.s32.totalorder %s307_s2, %s307_s2 }
  0x29   :  { %356 = vmatprep.subr.bf16.mxu0 %v509_v0  ;;  %376 = vmatprep.subr.bf16.mxu1 %v509_v0  ;;  %v406_v9 = vld [vmem:[#allocation7 + $0x18] sm:$0xff]   ;;  %v61_v10 = vmul.f32 %v316_v7, %v55_v5  ;;  %v413_v17 = vld [vmem:[#allocation7 + $0x60] sm:$0xff]   ;;  %v408_v18 = vld [vmem:[#allocation7 + $0x8] sm:$0xff]   ;;  %vm69_vm1 = vcmp.lt.s32.totalorder %v54_v16, 4  ;;  %vm181_vm2 = vcmp.ge.s32.totalorder %v54_v16, 26  ;;  %vm182_vm3 = vcmp.lt.s32.totalorder %v54_v16, 34  ;;  %p479_p1 = scmp.ne.s32.totalorder %s307_s2, %s478_s28  ;;  %p484_p3 = scmp.lt.s32.totalorder %s478_s28, %s478_s28 }
  0x2a   :  { %v414_v20 = vld [vmem:[#allocation7 + $0x58] sm:$0xff]   ;;  %v409_v21 = vld [vmem:[#allocation7] sm:$0xff]   ;;  %v415_v23 = vld [vmem:[#allocation7 + $0x50] sm:$0xff]  }
  0x2b   :  { %v67_v15 = vadd.f32 %v317_v11, %v61_v10  ;;  %v416_v25 = vld [vmem:[#allocation7 + $0x48] sm:$0xff]   ;;  %v417_v26 = vld [vmem:[#allocation7 + $0x40] sm:$0xff]   ;;  %v318_v27 = vld [vmem:[#allocation5 + $0x2] ss:$0 sm:$0xff]  ;;  %p485_p4 = por %p484_p3, %p483_p2 }
  0x2c   :  { %357 = vmatpush3.bf16.msra.mxu0 %v403_v2  ;;  %377 = vmatpush3.bf16.msra.mxu1 %v411_v8  ;;  %vm183_vm4 = vmand %vm181_vm2, %vm182_vm3  ;;  %v327_v37 = vld [vmem:[#allocation5 + $0x3] ss:$0 sm:$0xff] }
  0x2d   :  { %358 = vmatprep.subr.bf16.mxu0 %v509_v0  ;;  %378 = vmatprep.subr.bf16.mxu1 %v509_v0  ;;  %v68_v19 = vmax.f32 %v67_v15, 0.0  ;;  %p486_p5 = pnand %p485_p4, %p479_p1 }
  0x2f   :  { %v70_v22 = vsel %vm69_vm1, %v68_v19, %v55_v5 }
  0x30   :  { %359 = vmatpush3.bf16.msra.mxu0 %v404_v3  ;;  %379 = vmatpush3.bf16.msra.mxu1 %v412_v13  ;;  %v71_v24 = vpack.c.bf16 %v70_v22, %v70_v22 }
  0x31   :  { %360 = vmatprep.subr.bf16.mxu0 %v509_v0  ;;  %380 = vmatprep.subr.bf16.mxu1 %v509_v0 }
  0x34   :  { %361 = vmatpush3.bf16.msra.mxu0 %v405_v4  ;;  %381 = vmatpush3.bf16.msra.mxu1 %v413_v17 }
  0x35   :  { %362 = vmatprep.subr.bf16.mxu0 %v509_v0  ;;  %382 = vmatprep.subr.bf16.mxu1 %v509_v0 }
  0x38   :  { %363 = vmatpush3.bf16.msra.mxu0 %v406_v9  ;;  %383 = vmatpush3.bf16.msra.mxu1 %v414_v20 }
  0x39   :  { %364 = vmatprep.subr.bf16.mxu0 %v509_v0  ;;  %384 = vmatprep.subr.bf16.mxu1 %v509_v0 }
  0x3c   :  { %365 = vmatpush3.bf16.msra.mxu0 %v407_v14  ;;  %385 = vmatpush3.bf16.msra.mxu1 %v415_v23 }
  0x3d   :  { %366 = vmatprep.subr.bf16.mxu0 %v509_v0  ;;  %386 = vmatprep.subr.bf16.mxu1 %v509_v0 }
  0x40   :  { %367 = vmatpush3.bf16.msra.mxu0 %v408_v18  ;;  %387 = vmatpush3.bf16.msra.mxu1 %v416_v25 }
  0x41   :  { %368 = vmatprep.subr.bf16.mxu0 %v509_v0  ;;  %388 = vmatprep.subr.bf16.mxu1 %v509_v0 }
  0x44   :  { %369 = vmatpush3.bf16.msra.mxu0 %v409_v21  ;;  %389 = vmatpush3.bf16.msra.mxu1 %v417_v26 }
  0x47   :  { %371 = vmatmul.mubr.bf16.vlgmr.msra.gmra.mxu0 %v71_v24 }
 0x107   :  { %v175_v28 = vpop.f32.mrf.mxu0 }
 0x108   :  { %v176_v29 = vadd.f32 %v318_v27, %v175_v28 }
 0x109   :  { %v372_v30 = vpop.f32.mrf.mxu0 }
 0x10a   :  { %v184_v31 = vmax.f32 %v176_v29, 0.0 }
 0x10b   :  { %v178_v32 = vpop.f32.mrf.mxu0 }
 0x10c   :  { %v185_v33 = vsel %vm183_vm4, %v184_v31, %v176_v29 }
 0x10d   :  { %v373_v34 = vpop.f32.mrf.mxu0  ;;  %v186_v35 = vadd.f32 %v185_v33, %v70_v22 }
 0x10f   :  { %v187_v36 = vpack.c.bf16 %v186_v35, %v186_v35 }
 0x111   :  { %391 = vmatmul.mubr.bf16.vlgmr.msra.gmra.mxu1 %v187_v36 }
 0x1d1   :  { %v291_v38 = vpop.f32.mrf.mxu1 }
 0x1d2   :  { %v292_v39 = vadd.f32 %v327_v37, %v291_v38 }
 0x1d3   :  { %v392_v40 = vpop.f32.mrf.mxu1 }
 0x1d4   :  { %v297_v41 = vmax.f32 %v292_v39, 0.0 }
 0x1d5   :  { %v294_v42 = vpop.f32.mrf.mxu1 }
 0x1d6   :  { %v298_v43 = vadd.f32 %v297_v41, %v186_v35 }
 0x1d7   :  { %v393_v44 = vpop.f32.mrf.mxu1 }
 0x1d8   :  { %299 = vst [vmem:[#allocation8] sm:$0xff] %v298_v43 }
 0x1d9   :  { %489 = shalt.err (!%p486_p5)
}
 0x1da   :  { %309 = dma.vmem_to_hbm [thread:$0]  %s307_s2, 128, %s547_s3, [#allocation4]  }
 0x1db   :  { %502 = dma.done.wait [#allocation4], 128  }
 0x1dc   :  { %503 = vsyncadd [#allocation4], 4294967168 }
 0x1dd   :  { %313 = vsyncpa [#allocation3], 1 }
 0x1de   :  { %314 = vsyncpa [#allocation6], 1 }
 0x1df   :  { %315 = vsyncpa [#allocation4], 1 }

</bundles_post_ra>
